<compile_context>
chip_gen: v7x
topology: tpu7x:2x2x1
jax: 0.10.0
libtpu: 0.0.40
codegen_flags: <defaults>
</compile_context>

<pallas_src>
import jax
import jax.numpy as jnp
from jax import lax
from jax.experimental import pallas as pl
from jax.experimental.pallas import tpu as pltpu

N_FREQS = 20        # SimpleImplicitFeaturizer n_freqs
NUM_SCALES = 20     # IFA num_scales
BN_EPS = 1e-5       # nn.BatchNorm2d default eps
LEAKY_SLOPE = 0.01  # nn.LeakyReLU default negative_slope

# TODO(synk): IFA.__init__'s `self.scales` is never used in forward (and
# torch.exp on an int tensor would error anyway), so it is not replicated.
# TODO(synk): BatchNorm is evaluated in training mode (batch statistics), the
# same choice as the module freshly constructed in train(); eval-mode running
# stats would just change the scale/shift fed to pass B.


# ----------------------------------------------------------------------------
# Pallas kernels.  Data layout is channel-major: (channels, pixels) with
# pixels (row-major, whole image rows per tile) on the lane axis.
# ----------------------------------------------------------------------------
def _conv1_plus_bias(src_ref, a_ref, rexp_ref, bt_ref, w1_ref):
    """conv1 over the source channels + exact separable coordinate bias."""
    y = jnp.dot(w1_ref[...], src_ref[0],
                preferred_element_type=jnp.float32)            # (Cf, tm) f32
    # Row-dependent bias: a_ref is (R, Cf) for this tile's rows, rexp_ref is a
    # resident (R, tm) 0/1 expansion matrix; contraction over R selects
    # A[row(p), c] for every pixel p (MXU is idle anyway).
    bias_rows = lax.dot_general(
        a_ref[...], rexp_ref[...],
        dimension_numbers=(((0,), (0,)), ((), ())),
        preferred_element_type=jnp.float32)                    # (Cf, tm) f32
    # Column-dependent bias: B tiled R times, resident in VMEM.
    return y + bias_rows + bt_ref[...]


def _stats_kernel(src_ref, a_ref, rexp_ref, bt_ref, w1_ref, ps_ref):
    """Pass A: accumulate per-(batch, split) BatchNorm sum / sum-of-squares."""
    y1 = _conv1_plus_bias(src_ref, a_ref, rexp_ref, bt_ref, w1_ref)

    @pl.when(pl.program_id(2) == 0)
    def _():
        ps_ref[...] = jnp.zeros_like(ps_ref)

    # TODO(synk): E[x^2]-E[x]^2 can cancel for huge images; fine at this scale.
    ps_ref[0, 0, :, 0:1] += jnp.sum(y1, axis=1, keepdims=True)
    ps_ref[0, 0, :, 1:2] += jnp.sum(y1 * y1, axis=1, keepdims=True)


def _apply_kernel(src_ref, a_ref, rexp_ref, bt_ref, w1_ref,
                  sc_ref, sh_ref, w2_ref, b2_ref, o_ref):
    """Pass B: conv1 + fused BN affine + LeakyReLU + conv2, lane-dense store."""
    y1 = _conv1_plus_bias(src_ref, a_ref, rexp_ref, bt_ref, w1_ref)
    yn = y1 * sc_ref[...] + sh_ref[...]
    act = jnp.maximum(yn, LEAKY_SLOPE * yn)        # LeakyReLU, 0 < slope < 1
    out = jnp.dot(w2_ref[...], act.astype(jnp.bfloat16),
                  preferred_element_type=jnp.float32) + b2_ref[...]
    o_ref[0, :, :] = out.astype(o_ref.dtype)


# ----------------------------------------------------------------------------
# Tiling selection: R image rows per tile, tile width tm = R * W2.
# ----------------------------------------------------------------------------
def _pick_rows(H2, W2, *, max_tm=8192, max_rowexp_elems=1 << 20):
    """Pick rows-per-tile R.

    Constraints: R divides H2; R % 8 == 0 so the (R, Cf) A-block is legal;
    tm = R*W2 a multiple of 128 so src/out blocks are lane-aligned; tm and the
    resident (R, tm) row-expansion matrix stay comfortably inside VMEM.
    Fallback: whole image per grid step (block == full dims is always legal).
    """
    best = None
    r = 8
    while r <= H2:
        if H2 % r == 0:
            tm = r * W2
            if tm % 128 == 0 and tm <= max_tm and r * tm <= max_rowexp_elems:
                best = r
        r += 8
    if best is not None:
        return best
    if H2 * H2 * W2 > 2 * max_rowexp_elems:
        # TODO(synk): huge images whose width defeats 128-lane row tiling would
        # need column padding + masked BN statistics; not implemented.
        raise NotImplementedError(f"no legal row tiling for H2={H2}, W2={W2}")
    return H2


# ----------------------------------------------------------------------------
# Two-pass MLP (conv1 -> BN -> LeakyReLU -> conv2) on the channel-major layout.
# ----------------------------------------------------------------------------
def mlp_pallas(src_cm, a_hc, rowexp, b_tiled, w1t, gamma_c, beta_c, w2t, b2_c,
               *, out_dtype=jnp.float32):
    """src_cm: (b, c, Np) bf16 -> (b, Cf, Np) out_dtype."""
    b, c, np_ = src_cm.shape
    cf = w1t.shape[0]
    R, tm = rowexp.shape
    assert np_ % tm == 0
    nt = np_ // tm
    # Split the tile axis in two parallel shards when possible so both v7x
    # TensorCores get work even for b == 1 (pass A's tile axis is a reduction).
    n_split = 2 if (nt >= 2 and nt % 2 == 0) else 1
    nti = nt // n_split
    grid = (b, n_split, nti)

    def tidx(s, it):
        return s * nti + it

    src_spec = pl.BlockSpec((1, c, tm), lambda bi, s, it: (bi, 0, tidx(s, it)))
    a_spec = pl.BlockSpec((R, cf), lambda bi, s, it: (tidx(s, it), 0))
    rexp_spec = pl.BlockSpec((R, tm), lambda bi, s, it: (0, 0))
    bt_spec = pl.BlockSpec((cf, tm), lambda bi, s, it: (0, 0))
    w1_spec = pl.BlockSpec((cf, c), lambda bi, s, it: (0, 0))
    vec_spec = pl.BlockSpec((cf, 1), lambda bi, s, it: (0, 0))
    w2_spec = pl.BlockSpec((cf, cf), lambda bi, s, it: (0, 0))

    vmem_cap = 32 * 1024 * 1024

    # ---- Pass A: BN sum / sum-sq accumulated in the resident output block. --
    pstats = pl.pallas_call(
        _stats_kernel,
        out_shape=jax.ShapeDtypeStruct((b, n_split, cf, 2), jnp.float32),
        grid_spec=pltpu.PrefetchScalarGridSpec(
            num_scalar_prefetch=0,
            grid=grid,
            in_specs=[src_spec, a_spec, rexp_spec, bt_spec, w1_spec],
            out_specs=pl.BlockSpec((1, 1, cf, 2),
                                   lambda bi, s, it: (bi, s, 0, 0)),
        ),
        compiler_params=pltpu.CompilerParams(
            dimension_semantics=("parallel", "parallel", "arbitrary"),
            vmem_limit_bytes=vmem_cap),
    )(src_cm, a_hc, rowexp, b_tiled, w1t)

    # ---- Tiny cross-shard reduction + BN affine folding (f32, plain JAX). ---
    tot = jnp.sum(pstats, axis=(0, 1))                         # (Cf, 2)
    n = jnp.float32(b * np_)
    mean = tot[:, 0:1] / n
    var = jnp.maximum(tot[:, 1:2] / n - mean * mean, 0.0)      # biased batch var
    invstd = lax.rsqrt(var + BN_EPS)
    scale = invstd * gamma_c                                   # (Cf, 1)
    shift = beta_c - mean * scale                              # (Cf, 1)

    # ---- Pass B: normalize + LeakyReLU + conv2, write output once. ----------
    out = pl.pallas_call(
        _apply_kernel,
        out_shape=jax.ShapeDtypeStruct((b, cf, np_), out_dtype),
        grid_spec=pltpu.PrefetchScalarGridSpec(
            num_scalar_prefetch=0,
            grid=grid,
            in_specs=[src_spec, a_spec, rexp_spec, bt_spec, w1_spec,
                      vec_spec, vec_spec, w2_spec, vec_spec],
            out_specs=pl.BlockSpec((1, cf, tm),
                                   lambda bi, s, it: (bi, 0, tidx(s, it))),
        ),
        compiler_params=pltpu.CompilerParams(
            dimension_semantics=("parallel", "parallel", "parallel"),
            vmem_limit_bytes=vmem_cap),
    )(src_cm, a_hc, rowexp, b_tiled, w1t, scale, shift, w2t, b2_c)
    return out


# ----------------------------------------------------------------------------
# Plain-JAX glue replicating the PyTorch feature construction (NCHW).
# ----------------------------------------------------------------------------
def _nearest_up2(x):  # NCHW nearest-neighbor x2 == pixel repeat
    return jnp.repeat(jnp.repeat(x, 2, axis=2), 2, axis=3)


def simple_implicit_feats(img):
    """SimpleImplicitFeaturizer.forward — img: (b, c, H, W) NCHW."""
    b, c, H, W = img.shape
    grid_h = jnp.linspace(-1.0, 1.0, H)
    grid_w = jnp.linspace(-1.0, 1.0, W)
    gh, gw = jnp.meshgrid(grid_h, grid_w, indexing="ij")
    feats = jnp.stack([gh, gw], axis=0)[None]                   # (1, 2, H, W)
    feats = jnp.broadcast_to(feats, (b, 2, H, W))
    feats = feats[:, None]                                      # (b, 1, 2, H, W)
    freqs = jnp.exp(jnp.linspace(-2.0, 10.0, N_FREQS)).reshape(
        1, N_FREQS, 1, 1, 1)
    feats = feats * freqs                                       # (b, nf, 2, H, W)
    feats = feats.reshape(b, N_FREQS * 2, H, W)
    return jnp.concatenate([jnp.sin(feats), jnp.cos(feats), img], axis=1)


def _coord_table(h):
    """(41, 2h) table of the row-dependent (== column-dependent, since h == w)
    coordinate features, ordered as [sin(f_k*g)], [cos(f_k*g)], nearest-up(lr)-hr."""
    H2 = 2 * h
    freqs = jnp.exp(jnp.linspace(-2.0, 10.0, N_FREQS))
    g = jnp.linspace(-1.0, 1.0, H2)
    lr = jnp.linspace(0.0, float(h), h)
    hr = jnp.linspace(0.0, float(h), H2)
    phase = freqs[:, None] * g[None, :]                         # (20, H2)
    diff = jnp.repeat(lr, 2) - hr                               # (H2,)
    return jnp.concatenate([jnp.sin(phase), jnp.cos(phase), diff[None, :]],
                           axis=0).astype(jnp.float32)


def _row_col_channel_indices():
    """Indices (within the 82 coord channels) that depend on row / col only."""
    row = ([2 * k for k in range(N_FREQS)]
           + [2 * N_FREQS + 2 * k for k in range(N_FREQS)]
           + [4 * N_FREQS])
    col = [i + 1 for i in row]
    return row, col


def ifa_forward(source, guidance, params, *, out_dtype=jnp.float32):
    """IFA.forward — source: (b, feat_dim, h, w) NCHW; guidance is unused."""
    del guidance  # unused by the reference module's forward as well
    W1, b1, gamma, beta, W2w, b2 = params
    b, c, h, w = source.shape
    assert h == w
    cf = W1.shape[1]
    H2, W2sz = 2 * h, 2 * w
    np_ = H2 * W2sz

    R = _pick_rows(H2, W2sz)
    tm = R * W2sz

    # Nearest x2 upsample; stays channel-major (NCHW) end-to-end.
    src_cm = _nearest_up2(source).reshape(b, c, np_).astype(jnp.bfloat16)

    # Exact separable coordinate bias (batch independent, tiny):
    #   conv1_coord(pixel i,j) == A[:, i] + B[:, j],  b1 folded into A.
    table = _coord_table(h)                                     # (41, H2) f32
    row_idx, col_idx = _row_col_channel_indices()
    w1_coord = W1[c:, :].astype(jnp.float32)                    # (82, Cf)
    a_hc = (table.T @ w1_coord[row_idx, :]
            + b1.reshape(1, cf)).astype(jnp.float32)            # (H2, Cf)
    b_cw = (w1_coord[col_idx, :].T @ table).astype(jnp.float32)  # (Cf, W2)
    b_tiled = jnp.tile(b_cw, (1, R))                            # (Cf, tm) resident
    rowexp = (jnp.arange(tm, dtype=jnp.int32)[None, :] // W2sz ==
              jnp.arange(R, dtype=jnp.int32)[:, None]).astype(jnp.float32)

    w1t = W1[:c, :].T.astype(jnp.bfloat16)                      # (Cf, c)
    w2t = W2w.T.astype(jnp.bfloat16)                            # (Cf, Cf)

    out_cm = mlp_pallas(src_cm, a_hc, rowexp, b_tiled, w1t,
                        gamma.reshape(cf, 1).astype(jnp.float32),
                        beta.reshape(cf, 1).astype(jnp.float32),
                        w2t, b2.reshape(cf, 1).astype(jnp.float32),
                        out_dtype=out_dtype)
    return out_cm.reshape(b, cf, H2, W2sz)                      # NCHW, no transpose


# ----------------------------------------------------------------------------
# Pure-JAX f32 reference of the MLP (for the sanity check).
# ----------------------------------------------------------------------------
def _mlp_ref(x, params):
    W1, b1, gamma, beta, W2w, b2 = params
    y1 = x @ W1 + b1
    mean = y1.mean(axis=0, keepdims=True)
    var = ((y1 - mean) ** 2).mean(axis=0, keepdims=True)
    yn = (y1 - mean) / jnp.sqrt(var + BN_EPS) * gamma + beta
    act = jnp.where(yn > 0, yn, LEAKY_SLOPE * yn)
    return act @ W2w + b2


if __name__ == "__main__":
    feat_dim = 32
    b, h, w = 2, 8, 8
    Cin = feat_dim + NUM_SCALES * 4 + 2   # = feat_dim + 82

    keys = jax.random.split(jax.random.PRNGKey(0), 8)
    W1 = 0.05 * jax.random.normal(keys[0], (Cin, feat_dim), jnp.float32)
    b1 = 0.05 * jax.random.normal(keys[1], (1, feat_dim), jnp.float32)
    gamma = 1.0 + 0.1 * jax.random.normal(keys[2], (1, feat_dim), jnp.float32)
    beta = 0.05 * jax.random.normal(keys[3], (1, feat_dim), jnp.float32)
    W2 = 0.05 * jax.random.normal(keys[4], (feat_dim, feat_dim), jnp.float32)
    b2 = 0.05 * jax.random.normal(keys[5], (1, feat_dim), jnp.float32)
    params = (W1, b1, gamma, beta, W2, b2)

    source = jax.random.normal(keys[6], (b, feat_dim, h, w), jnp.float32)
    guidance = jax.random.normal(keys[7], (b, 3, 2 * h, 2 * w), jnp.float32)

    out = jax.jit(ifa_forward)(source, guidance, params)
    out = jax.block_until_ready(out)
    assert out.shape == (b, feat_dim, 2 * h, 2 * w), out.shape

    # Sanity check against a pure-f32 JAX reference of the full module.
    up_source = _nearest_up2(source)
    lr = jnp.linspace(0.0, float(h), h)
    hr = jnp.linspace(0.0, float(h), 2 * h)
    lr_i, lr_j = jnp.meshgrid(lr, lr, indexing="ij")
    hr_i, hr_j = jnp.meshgrid(hr, hr, indexing="ij")
    coord_diff = _nearest_up2(jnp.stack([lr_i, lr_j], 0)[None]) - \
        jnp.stack([hr_i, hr_j], 0)[None]
    cdf = jnp.broadcast_to(simple_implicit_feats(coord_diff),
                           (b, Cin - feat_dim, 2 * h, 2 * w))
    x_full = jnp.concatenate([up_source, cdf], axis=1)
    x_rows = jnp.transpose(x_full, (0, 2, 3, 1)).reshape(-1, Cin)
    ref_rows = _mlp_ref(x_rows, params)
    ref = ref_rows.reshape(b, 2 * h, 2 * w, feat_dim).transpose(0, 3, 1, 2)

    max_err = float(jnp.max(jnp.abs(out - ref)))
    assert jnp.allclose(out, ref, rtol=1e-2, atol=1e-2), max_err

    print("KERNEL_OK")
</pallas_src>

<mosaic_0001>
module attributes {stable_mosaic.version = 11 : i64} {
  func.func @_stats_kernel(%arg0: i32, %arg1: i32, %arg2: i32, %arg3: memref<1x32x256xbf16, #tpu.memory_space<vmem>>, %arg4: memref<16x32xf32, #tpu.memory_space<vmem>>, %arg5: memref<16x256xf32, #tpu.memory_space<vmem>>, %arg6: memref<32x256xf32, #tpu.memory_space<vmem>>, %arg7: memref<32x32xbf16, #tpu.memory_space<vmem>>, %arg8: memref<1x1x32x2xf32, #tpu.memory_space<vmem>>) attributes {dimension_semantics = [#tpu.dimension_semantics<parallel>, #tpu.dimension_semantics<parallel>, #tpu.dimension_semantics<arbitrary>], iteration_bounds = array<i64: 2, 1, 1>, scalar_prefetch = 0 : i64, scratch_operands = 0 : i64, tpu.core_type = #tpu.core_type<tc>, window_params = [{transform_indices = @transform_0, window_bounds = array<i64: 1, 32, 256>}, {transform_indices = @transform_1, window_bounds = array<i64: 16, 32>}, {pipeline_mode = #tpu.pipeline_mode<synchronous>, transform_indices = @transform_2, window_bounds = array<i64: 16, 256>}, {pipeline_mode = #tpu.pipeline_mode<synchronous>, transform_indices = @transform_3, window_bounds = array<i64: 32, 256>}, {pipeline_mode = #tpu.pipeline_mode<synchronous>, transform_indices = @transform_4, window_bounds = array<i64: 32, 32>}, {transform_indices = @transform_5, window_bounds = array<i64: 1, 1, 32, 2>}]} {
    %c0 = arith.constant 0 : index
    %c0_0 = arith.constant 0 : index
    %0 = vector.load %arg7[%c0, %c0_0] : memref<32x32xbf16, #tpu.memory_space<vmem>>, vector<32x32xbf16>
    %c0_1 = arith.constant 0 : index
    %c0_2 = arith.constant 0 : index
    %c0_3 = arith.constant 0 : index
    %1 = vector.load %arg3[%c0_1, %c0_2, %c0_3] : memref<1x32x256xbf16, #tpu.memory_space<vmem>>, vector<1x32x256xbf16>
    %2 = vector.shape_cast %1 : vector<1x32x256xbf16> to vector<32x256xbf16>
    %cst = arith.constant dense<0.000000e+00> : vector<32x256xf32>
    %3 = tpu.matmul %0, %2, %cst {dimension_numbers = #tpu.dot_dimension_numbers<[1], [0], [0], [1], [0, 0, 1, 1], [], []>} : vector<32x32xbf16>, vector<32x256xbf16>, vector<32x256xf32> -> vector<32x256xf32>
    %c0_4 = arith.constant 0 : index
    %c0_5 = arith.constant 0 : index
    %4 = vector.load %arg4[%c0_4, %c0_5] : memref<16x32xf32, #tpu.memory_space<vmem>>, vector<16x32xf32>
    %c0_6 = arith.constant 0 : index
    %c0_7 = arith.constant 0 : index
    %5 = vector.load %arg5[%c0_6, %c0_7] : memref<16x256xf32, #tpu.memory_space<vmem>>, vector<16x256xf32>
    %cst_8 = arith.constant dense<0.000000e+00> : vector<32x256xf32>
    %6 = tpu.matmul %4, %5, %cst_8 {dimension_numbers = #tpu.dot_dimension_numbers<[0], [0], [1], [1], [0, 1, 1, 1], [], []>} : vector<16x32xf32>, vector<16x256xf32>, vector<32x256xf32> -> vector<32x256xf32>
    %7 = arith.addf %3, %6 : vector<32x256xf32>
    %c0_9 = arith.constant 0 : index
    %c0_10 = arith.constant 0 : index
    %8 = vector.load %arg6[%c0_9, %c0_10] : memref<32x256xf32, #tpu.memory_space<vmem>>, vector<32x256xf32>
    %9 = arith.addf %7, %8 : vector<32x256xf32>
    %c0_i32 = arith.constant 0 : i32
    %10 = arith.cmpi eq, %arg2, %c0_i32 : i32
    %11 = arith.extui %10 : i1 to i32
    %c0_i32_11 = arith.constant 0 : i32
    %12 = arith.cmpi ne, %11, %c0_i32_11 : i32
    scf.if %12 {
      %cst_29 = arith.constant 0.000000e+00 : f32
      %30 = vector.broadcast %cst_29 : f32 to vector<1x1x32x2xf32>
      %c0_30 = arith.constant 0 : index
      %c0_31 = arith.constant 0 : index
      %c0_32 = arith.constant 0 : index
      %c0_33 = arith.constant 0 : index
      %31 = vector.load %arg8[%c0_30, %c0_31, %c0_32, %c0_33] : memref<1x1x32x2xf32, #tpu.memory_space<vmem>>, vector<1x1x32x2xf32>
      tpu.vector_store %arg8[%c0_30, %c0_31, %c0_32, %c0_33], %30 {strides = array<i32>} : memref<1x1x32x2xf32, #tpu.memory_space<vmem>>, vector<1x1x32x2xf32>,
    } else {
    }
    %c0_12 = arith.constant 0 : index
    %c0_13 = arith.constant 0 : index
    %c0_14 = arith.constant 0 : index
    %c0_15 = arith.constant 0 : index
    %13 = vector.load %arg8[%c0_12, %c0_13, %c0_14, %c0_15] : memref<1x1x32x2xf32, #tpu.memory_space<vmem>>, vector<1x1x32x1xf32>
    %14 = vector.shape_cast %13 : vector<1x1x32x1xf32> to vector<32x1xf32>
    %cst_16 = arith.constant dense<0.000000e+00> : vector<32xf32>
    %15 = vector.multi_reduction <add>, %9, %cst_16 [1] : vector<32x256xf32> to vector<32xf32>
    %16 = vector.shape_cast %15 : vector<32xf32> to vector<32x1xf32>
    %17 = arith.addf %14, %16 : vector<32x1xf32>
    %c0_17 = arith.constant 0 : index
    %c0_18 = arith.constant 0 : index
    %c0_19 = arith.constant 0 : index
    %c0_20 = arith.constant 0 : index
    %18 = vector.load %arg8[%c0_17, %c0_18, %c0_19, %c0_20] : memref<1x1x32x2xf32, #tpu.memory_space<vmem>>, vector<1x1x32x1xf32>
    %19 = vector.shape_cast %18 : vector<1x1x32x1xf32> to vector<32x1xf32>
    %20 = vector.shape_cast %17 : vector<32x1xf32> to vector<1x1x32x1xf32>
    tpu.vector_store %arg8[%c0_17, %c0_18, %c0_19, %c0_20], %20 {strides = array<i32>} : memref<1x1x32x2xf32, #tpu.memory_space<vmem>>, vector<1x1x32x1xf32>,
    %c0_21 = arith.constant 0 : index
    %c0_22 = arith.constant 0 : index
    %c0_23 = arith.constant 0 : index
    %c1 = arith.constant 1 : index
    %21 = vector.load %arg8[%c0_21, %c0_22, %c0_23, %c1] : memref<1x1x32x2xf32, #tpu.memory_space<vmem>>, vector<1x1x32x1xf32>
    %22 = vector.shape_cast %21 : vector<1x1x32x1xf32> to vector<32x1xf32>
    %23 = arith.mulf %9, %9 : vector<32x256xf32>
    %cst_24 = arith.constant dense<0.000000e+00> : vector<32xf32>
    %24 = vector.multi_reduction <add>, %23, %cst_24 [1] : vector<32x256xf32> to vector<32xf32>
    %25 = vector.shape_cast %24 : vector<32xf32> to vector<32x1xf32>
    %26 = arith.addf %22, %25 : vector<32x1xf32>
    %c0_25 = arith.constant 0 : index
    %c0_26 = arith.constant 0 : index
    %c0_27 = arith.constant 0 : index
    %c1_28 = arith.constant 1 : index
    %27 = vector.load %arg8[%c0_25, %c0_26, %c0_27, %c1_28] : memref<1x1x32x2xf32, #tpu.memory_space<vmem>>, vector<1x1x32x1xf32>
    %28 = vector.shape_cast %27 : vector<1x1x32x1xf32> to vector<32x1xf32>
    %29 = vector.shape_cast %26 : vector<32x1xf32> to vector<1x1x32x1xf32>
    tpu.vector_store %arg8[%c0_25, %c0_26, %c0_27, %c1_28], %29 {strides = array<i32>} : memref<1x1x32x2xf32, #tpu.memory_space<vmem>>, vector<1x1x32x1xf32>,
    return
  }
  func.func @transform_0(%arg0: i32, %arg1: i32, %arg2: i32) -> (i32, i32, i32) {
    %c1_i32 = arith.constant 1 : i32
    %0 = arith.muli %arg1, %c1_i32 : i32
    %1 = arith.addi %0, %arg2 : i32
    %c0_i32 = arith.constant 0 : i32
    %c0_i32_0 = arith.constant 0 : i32
    return %arg0, %c0_i32, %1 : i32, i32, i32
  }
  func.func @transform_1(%arg0: i32, %arg1: i32, %arg2: i32) -> (i32, i32) {
    %c1_i32 = arith.constant 1 : i32
    %0 = arith.muli %arg1, %c1_i32 : i32
    %1 = arith.addi %0, %arg2 : i32
    %c0_i32 = arith.constant 0 : i32
    %c0_i32_0 = arith.constant 0 : i32
    return %1, %c0_i32 : i32, i32
  }
  func.func @transform_2(%arg0: i32, %arg1: i32, %arg2: i32) -> (i32, i32) {
    %c0_i32 = arith.constant 0 : i32
    %c0_i32_0 = arith.constant 0 : i32
    %c0_i32_1 = arith.constant 0 : i32
    return %c0_i32, %c0_i32_0 : i32, i32
  }
  func.func @transform_3(%arg0: i32, %arg1: i32, %arg2: i32) -> (i32, i32) {
    %c0_i32 = arith.constant 0 : i32
    %c0_i32_0 = arith.constant 0 : i32
    %c0_i32_1 = arith.constant 0 : i32
    return %c0_i32, %c0_i32_0 : i32, i32
  }
  func.func @transform_4(%arg0: i32, %arg1: i32, %arg2: i32) -> (i32, i32) {
    %c0_i32 = arith.constant 0 : i32
    %c0_i32_0 = arith.constant 0 : i32
    %c0_i32_1 = arith.constant 0 : i32
    return %c0_i32, %c0_i32_0 : i32, i32
  }
  func.func @transform_5(%arg0: i32, %arg1: i32, %arg2: i32) -> (i32, i32, i32, i32) {
    %c0_i32 = arith.constant 0 : i32
    %c0_i32_0 = arith.constant 0 : i32
    %c0_i32_1 = arith.constant 0 : i32
    return %arg0, %arg1, %c0_i32, %c0_i32_0 : i32, i32, i32, i32
  }
}

module attributes {stable_mosaic.version = 11 : i64} {
  func.func @_apply_kernel(%arg0: i32, %arg1: i32, %arg2: i32, %arg3: memref<1x32x256xbf16, #tpu.memory_space<vmem>>, %arg4: memref<16x32xf32, #tpu.memory_space<vmem>>, %arg5: memref<16x256xf32, #tpu.memory_space<vmem>>, %arg6: memref<32x256xf32, #tpu.memory_space<vmem>>, %arg7: memref<32x32xbf16, #tpu.memory_space<vmem>>, %arg8: memref<32x1xf32, #tpu.memory_space<vmem>>, %arg9: memref<32x1xf32, #tpu.memory_space<vmem>>, %arg10: memref<32x32xbf16, #tpu.memory_space<vmem>>, %arg11: memref<32x1xf32, #tpu.memory_space<vmem>>, %arg12: memref<1x32x256xf32, #tpu.memory_space<vmem>>) attributes {dimension_semantics = [#tpu.dimension_semantics<parallel>, #tpu.dimension_semantics<parallel>, #tpu.dimension_semantics<parallel>], iteration_bounds = array<i64: 2, 1, 1>, scalar_prefetch = 0 : i64, scratch_operands = 0 : i64, tpu.core_type = #tpu.core_type<tc>, window_params = [{transform_indices = @transform_0, window_bounds = array<i64: 1, 32, 256>}, {transform_indices = @transform_1, window_bounds = array<i64: 16, 32>}, {pipeline_mode = #tpu.pipeline_mode<synchronous>, transform_indices = @transform_2, window_bounds = array<i64: 16, 256>}, {pipeline_mode = #tpu.pipeline_mode<synchronous>, transform_indices = @transform_3, window_bounds = array<i64: 32, 256>}, {pipeline_mode = #tpu.pipeline_mode<synchronous>, transform_indices = @transform_4, window_bounds = array<i64: 32, 32>}, {pipeline_mode = #tpu.pipeline_mode<synchronous>, transform_indices = @transform_5, window_bounds = array<i64: 32, 1>}, {pipeline_mode = #tpu.pipeline_mode<synchronous>, transform_indices = @transform_6, window_bounds = array<i64: 32, 1>}, {pipeline_mode = #tpu.pipeline_mode<synchronous>, transform_indices = @transform_7, window_bounds = array<i64: 32, 32>}, {pipeline_mode = #tpu.pipeline_mode<synchronous>, transform_indices = @transform_8, window_bounds = array<i64: 32, 1>}, {transform_indices = @transform_9, window_bounds = array<i64: 1, 32, 256>}]} {
    %c0 = arith.constant 0 : index
    %c0_0 = arith.constant 0 : index
    %0 = vector.load %arg7[%c0, %c0_0] : memref<32x32xbf16, #tpu.memory_space<vmem>>, vector<32x32xbf16>
    %c0_1 = arith.constant 0 : index
    %c0_2 = arith.constant 0 : index
    %c0_3 = arith.constant 0 : index
    %1 = vector.load %arg3[%c0_1, %c0_2, %c0_3] : memref<1x32x256xbf16, #tpu.memory_space<vmem>>, vector<1x32x256xbf16>
    %2 = vector.shape_cast %1 : vector<1x32x256xbf16> to vector<32x256xbf16>
    %cst = arith.constant dense<0.000000e+00> : vector<32x256xf32>
    %3 = tpu.matmul %0, %2, %cst {dimension_numbers = #tpu.dot_dimension_numbers<[1], [0], [0], [1], [0, 0, 1, 1], [], []>} : vector<32x32xbf16>, vector<32x256xbf16>, vector<32x256xf32> -> vector<32x256xf32>
    %c0_4 = arith.constant 0 : index
    %c0_5 = arith.constant 0 : index
    %4 = vector.load %arg4[%c0_4, %c0_5] : memref<16x32xf32, #tpu.memory_space<vmem>>, vector<16x32xf32>
    %c0_6 = arith.constant 0 : index
    %c0_7 = arith.constant 0 : index
    %5 = vector.load %arg5[%c0_6, %c0_7] : memref<16x256xf32, #tpu.memory_space<vmem>>, vector<16x256xf32>
    %cst_8 = arith.constant dense<0.000000e+00> : vector<32x256xf32>
    %6 = tpu.matmul %4, %5, %cst_8 {dimension_numbers = #tpu.dot_dimension_numbers<[0], [0], [1], [1], [0, 1, 1, 1], [], []>} : vector<16x32xf32>, vector<16x256xf32>, vector<32x256xf32> -> vector<32x256xf32>
    %7 = arith.addf %3, %6 : vector<32x256xf32>
    %c0_9 = arith.constant 0 : index
    %c0_10 = arith.constant 0 : index
    %8 = vector.load %arg6[%c0_9, %c0_10] : memref<32x256xf32, #tpu.memory_space<vmem>>, vector<32x256xf32>
    %9 = arith.addf %7, %8 : vector<32x256xf32>
    %c0_11 = arith.constant 0 : index
    %c0_12 = arith.constant 0 : index
    %10 = vector.load %arg8[%c0_11, %c0_12] : memref<32x1xf32, #tpu.memory_space<vmem>>, vector<32x1xf32>
    %11 = vector.broadcast %10 : vector<32x1xf32> to vector<32x256xf32>
    %12 = arith.mulf %9, %11 : vector<32x256xf32>
    %c0_13 = arith.constant 0 : index
    %c0_14 = arith.constant 0 : index
    %13 = vector.load %arg9[%c0_13, %c0_14] : memref<32x1xf32, #tpu.memory_space<vmem>>, vector<32x1xf32>
    %14 = vector.broadcast %13 : vector<32x1xf32> to vector<32x256xf32>
    %15 = arith.addf %12, %14 : vector<32x256xf32>
    %cst_15 = arith.constant 0.00999999977 : f32
    %16 = vector.broadcast %cst_15 : f32 to vector<32x256xf32>
    %17 = arith.mulf %16, %15 : vector<32x256xf32>
    %18 = arith.maximumf %15, %17 : vector<32x256xf32>
    %c0_16 = arith.constant 0 : index
    %c0_17 = arith.constant 0 : index
    %19 = vector.load %arg10[%c0_16, %c0_17] : memref<32x32xbf16, #tpu.memory_space<vmem>>, vector<32x32xbf16>
    %20 = arith.truncf %18 : vector<32x256xf32> to vector<32x256xbf16>
    %cst_18 = arith.constant dense<0.000000e+00> : vector<32x256xf32>
    %21 = tpu.matmul %19, %20, %cst_18 {dimension_numbers = #tpu.dot_dimension_numbers<[1], [0], [0], [1], [0, 0, 1, 1], [], []>} : vector<32x32xbf16>, vector<32x256xbf16>, vector<32x256xf32> -> vector<32x256xf32>
    %c0_19 = arith.constant 0 : index
    %c0_20 = arith.constant 0 : index
    %22 = vector.load %arg11[%c0_19, %c0_20] : memref<32x1xf32, #tpu.memory_space<vmem>>, vector<32x1xf32>
    %23 = vector.broadcast %22 : vector<32x1xf32> to vector<32x256xf32>
    %24 = arith.addf %21, %23 : vector<32x256xf32>
    %c0_21 = arith.constant 0 : index
    %c0_22 = arith.constant 0 : index
    %c0_23 = arith.constant 0 : index
    %25 = vector.load %arg12[%c0_21, %c0_22, %c0_23] : memref<1x32x256xf32, #tpu.memory_space<vmem>>, vector<1x32x256xf32>
    %26 = vector.shape_cast %25 : vector<1x32x256xf32> to vector<32x256xf32>
    %27 = vector.shape_cast %24 : vector<32x256xf32> to vector<1x32x256xf32>
    tpu.vector_store %arg12[%c0_21, %c0_22, %c0_23], %27 {strides = array<i32>} : memref<1x32x256xf32, #tpu.memory_space<vmem>>, vector<1x32x256xf32>,
    return
  }
  func.func @transform_0(%arg0: i32, %arg1: i32, %arg2: i32) -> (i32, i32, i32) {
    %c1_i32 = arith.constant 1 : i32
    %0 = arith.muli %arg1, %c1_i32 : i32
    %1 = arith.addi %0, %arg2 : i32
    %c0_i32 = arith.constant 0 : i32
    %c0_i32_0 = arith.constant 0 : i32
    return %arg0, %c0_i32, %1 : i32, i32, i32
  }
  func.func @transform_1(%arg0: i32, %arg1: i32, %arg2: i32) -> (i32, i32) {
    %c1_i32 = arith.constant 1 : i32
    %0 = arith.muli %arg1, %c1_i32 : i32
    %1 = arith.addi %0, %arg2 : i32
    %c0_i32 = arith.constant 0 : i32
    %c0_i32_0 = arith.constant 0 : i32
    return %1, %c0_i32 : i32, i32
  }
  func.func @transform_2(%arg0: i32, %arg1: i32, %arg2: i32) -> (i32, i32) {
    %c0_i32 = arith.constant 0 : i32
    %c0_i32_0 = arith.constant 0 : i32
    %c0_i32_1 = arith.constant 0 : i32
    return %c0_i32, %c0_i32_0 : i32, i32
  }
  func.func @transform_3(%arg0: i32, %arg1: i32, %arg2: i32) -> (i32, i32) {
    %c0_i32 = arith.constant 0 : i32
    %c0_i32_0 = arith.constant 0 : i32
    %c0_i32_1 = arith.constant 0 : i32
    return %c0_i32, %c0_i32_0 : i32, i32
  }
  func.func @transform_4(%arg0: i32, %arg1: i32, %arg2: i32) -> (i32, i32) {
    %c0_i32 = arith.constant 0 : i32
    %c0_i32_0 = arith.constant 0 : i32
    %c0_i32_1 = arith.constant 0 : i32
    return %c0_i32, %c0_i32_0 : i32, i32
  }
  func.func @transform_5(%arg0: i32, %arg1: i32, %arg2: i32) -> (i32, i32) {
    %c0_i32 = arith.constant 0 : i32
    %c0_i32_0 = arith.constant 0 : i32
    %c0_i32_1 = arith.constant 0 : i32
    return %c0_i32, %c0_i32_0 : i32, i32
  }
  func.func @transform_6(%arg0: i32, %arg1: i32, %arg2: i32) -> (i32, i32) {
    %c0_i32 = arith.constant 0 : i32
    %c0_i32_0 = arith.constant 0 : i32
    %c0_i32_1 = arith.constant 0 : i32
    return %c0_i32, %c0_i32_0 : i32, i32
  }
  func.func @transform_7(%arg0: i32, %arg1: i32, %arg2: i32) -> (i32, i32) {
    %c0_i32 = arith.constant 0 : i32
    %c0_i32_0 = arith.constant 0 : i32
    %c0_i32_1 = arith.constant 0 : i32
    return %c0_i32, %c0_i32_0 : i32, i32
  }
  func.func @transform_8(%arg0: i32, %arg1: i32, %arg2: i32) -> (i32, i32) {
    %c0_i32 = arith.constant 0 : i32
    %c0_i32_0 = arith.constant 0 : i32
    %c0_i32_1 = arith.constant 0 : i32
    return %c0_i32, %c0_i32_0 : i32, i32
  }
  func.func @transform_9(%arg0: i32, %arg1: i32, %arg2: i32) -> (i32, i32, i32) {
    %c1_i32 = arith.constant 1 : i32
    %0 = arith.muli %arg1, %c1_i32 : i32
    %1 = arith.addi %0, %arg2 : i32
    %c0_i32 = arith.constant 0 : i32
    %c0_i32_0 = arith.constant 0 : i32
    return %arg0, %c0_i32, %1 : i32, i32, i32
  }
}

</mosaic_0001>

<bundles_post_ra>
// kernel: ifa_forward.2
= control target key start
LH: loop header
LB: loop body
LE: loop exit
PB: predicated region body
PF: predicated region fallthrough
CT: control target
= control target key end

     0   :  { %s856_s18 = smov 0   ;;  %s858_s19 = smov 0   ;;  %s974_s0 = inlined_call_operand.vmem [shape: bf16[2,32,256], index: 0, kind: input, shape index: {}]   ;;  %s975_s1 = inlined_call_operand.vmem [shape: f32[16,32], index: 1, kind: input, shape index: {}]   ;;  %s976_s2 = inlined_call_operand.vmem [shape: f32[16,256], index: 2, kind: input, shape index: {}]   ;;  %s977_s3 = inlined_call_operand.vmem [shape: f32[32,256], index: 3, kind: input, shape index: {}]   ;;  %s978_s4 = inlined_call_operand.vmem [shape: bf16[32,32], index: 4, kind: input, shape index: {}]   ;;  %s979_s5 = inlined_call_operand.vmem [shape: f32[2,1,32,2], index: 5, kind: output, shape index: {}]  }
   0x1   :  { %s860_s20 = smov 0  }
   0x2 LB: > { %s34_s21 = sadd.s32 1, %s818_s19  ;;  %p741_p0 = scmp.ge.s32.totalorder %s822_s20, 1  ;;  %s822_s20 = sphi %s860_s20, %s15_s20   ;;  %s818_s19 = sphi %s858_s19, %s981_s19   ;;  %s814_s18 = sphi %s856_s18, %s980_s18  }
   0x3   : > { %p36_p1 = scmp.ge.s32.totalorder %s34_s21, 2  ;;  %p234_p2 = scmp.lt.s32.totalorder %s822_s20, 3 }
   0x5   : > { %s983_s21 = smov (%p36_p1, %s34_s21), 0  ;;  %p235_p3 = pnand %p741_p0, %p234_p2 }
   0x6   : > { %v315_v0 = vld [vmem:[%s975_s1] sm:$0xff] (!%p235_p3)  ;;  %p279_p4 = scmp.lt.s32.totalorder (!%p235_p3), %s814_s18, 1  ;;  %v318_v1 = vld [vmem:[%s976_s2 + $0x8] sm:$0xff] (!%p235_p3)  ;;  %v320_v2 = vld [vmem:[%s976_s2 + $0x18] sm:$0xff] (!%p235_p3)  ;;  %v824_v3 = vmov (!%p235_p3), 0   ;;  %v825_v9 = vmov (!%p235_p3), 0.0  }
   0x7   : > { %238 = sbr.rel (%p235_p3) target bundleno = 524 (0x20c), region = 40  ;;  %321 = vxpose.xlu0.b32.start [1/2] (short) (narrow) (!%p235_p3), %v315_v0, 32  ;;  %524 = vmatprep.mubr.bf16.mxu1 (!%p235_p3), %v824_v3  ;;  %v317_v4 = vld [vmem:[%s976_s2] sm:$0xff] (!%p235_p3)  ;;  %v319_v5 = vld [vmem:[%s976_s2 + $0x10] sm:$0xff] (!%p235_p3)  ;;  %v316_v6 = vld [vmem:[%s975_s1 + $0x8] sm:$0xff] (!%p235_p3)  ;;  %v762_v7 = vpack.c.bf16 (!%p235_p3), %v320_v2, %v318_v1  ;;  %vm485_vm0 = vcmask (!%p235_p3), 261120  }
   0x8   : > { %v764_v8 = vpack.c.bf16 (!%p235_p3), %v319_v5, %v317_v4  ;;  %430 = vmatprep.mubr.f32.mxu0 (!%p235_p3), %v825_v9  ;;  %v798_v14 = vld [vmem:[%s978_s4] sm:$0xff] (!%p235_p3)   ;;  %v799_v15 = vld [vmem:[%s978_s4 + $0x8] sm:$0xff] (!%p235_p3)   ;;  %vm353_vm1 = vcmask (!%p235_p3), 130048   ;;  %vm565_vm2 = vcmask (!%p235_p3), 15360   ;;  %v547_v36 = vld [vmem:[%s977_s3 + $0x10] sm:$0xff] (!%p235_p3)  ;;  %vm590_vm3 = vcmask (!%p235_p3), 7168  }
   0x9   : > { %763 = vmatprep.subr.bf16.mxu0 (!%p235_p3), %v762_v7  ;;  %v545_v29 = vld [vmem:[%s977_s3] sm:$0xff] (!%p235_p3)  ;;  %v546_v32 = vld [vmem:[%s977_s3 + $0x8] sm:$0xff] (!%p235_p3)  ;;  %v548_v40 = vld [vmem:[%s977_s3 + $0x18] sm:$0xff] (!%p235_p3)  ;;  %vm623_vm4 = vcmask (!%p235_p3), 15368  }
   0xa   : > { %765 = vmatpush1.bf16.msra.mxu0 (!%p235_p3), %v764_v8  ;;  %v549_v48 = vld [vmem:[%s977_s3 + $0x20] sm:$0xff] (!%p235_p3)  ;;  %v550_v52 = vld [vmem:[%s977_s3 + $0x28] sm:$0xff] (!%p235_p3)  ;;  %v551_v60 = vld [vmem:[%s977_s3 + $0x30] sm:$0xff] (!%p235_p3) }
   0xb   : > { %322 = vxpose.xlu0.b32.end [2/2] (short) (narrow) (!%p235_p3), %v316_v6, 32  ;;  %v552_v0 = vld [vmem:[%s977_s3 + $0x38] sm:$0xff] (!%p235_p3) }
   0xe   : > { %s985_s18 = smov (!%p279_p4, %s814_s18), 1 }
   0xf   : > { %s760_s9 = sshll.u32 %s985_s18, 5 }
  0x10   : > { %s286_s12 = scalar_lea.vmem %s974_s0, %s760_s9  ;;  %s911_s23 = scalar_lea.vmem %s979_s5, %s760_s9 }
  0x11   : > { %v792_v10 = vld [vmem:[%s286_s12 + $0x4] ss:$8 sps:$4 sm:$0xff]   ;;  %v794_v11 = vld [vmem:[%s286_s12] ss:$8 sps:$4 sm:$0xff]   ;;  %v795_v12 = vld [vmem:[%s286_s12 + $0x14] ss:$8 sps:$4 sm:$0xff]  }
  0x12   : > { %492 = vmatprep.subr.bf16.mxu1 %v792_v10  ;;  %v797_v13 = vld [vmem:[%s286_s12 + $0x10] ss:$8 sps:$4 sm:$0xff]   ;;  %566 = vst.msk [vmem:[%s911_s23] sm:$0xff] %vm565_vm2, %v825_v9  ;;  %567 = vst.msk [vmem:[%s911_s23 + $0x8] sm:$0xff] %vm565_vm2, %v825_v9 }
  0x13   : > { %493 = vmatpush1.bf16.msra.mxu1 %v794_v11  ;;  %568 = vst.msk [vmem:[%s911_s23 + $0x10] sm:$0xff] %vm565_vm2, %v825_v9  ;;  %569 = vst.msk [vmem:[%s911_s23 + $0x18] sm:$0xff] %vm565_vm2, %v825_v9 }
  0x14   : > { %494 = vmatprep.subr.bf16.mxu1 %v795_v12 }
  0x17   : > { %495 = vmatpush1.bf16.msra.mxu1 %v797_v13 }
  0x19   : > { %v570_v12 = vld [vmem:[%s911_s23] sm:$0xff] }
  0x1a   : > { %756 = vmatmul.mubr.msk.bf16.vlgmr.msra.gmra.mrb[0].mxu1 %vm485_vm0, %v798_v14 }
  0x1b   : > { %534 = vmatprep.mubr.bf16.mxu1 %v824_v3 }
  0x22   : > { %757 = vmatmul.mubr.msk.bf16.gmra.mrb[4].mxu1 %vm485_vm0, %v799_v15  ;;  %v571_v15 = vld [vmem:[%s911_s23 + $0x8] sm:$0xff] }
  0x87   : > { %v337_v16 = vpop.trf.xlu0 }
  0x88   : > { %746 = vmatmul.mubr.msk.f32.vlgmr.msra.gmra.mrb[0].mxu0 %vm353_vm1, %v337_v16 }
  0x89   : > { %436 = vmatprep.mubr.f32.mxu0 %v825_v9 }
  0x8b   : > { %v338_v17 = vpop.trf.xlu0 }
  0x8c   : > { %747 = vmatmul.mubr.msk.f32.gmra.mrb[2].mxu0 %vm353_vm1, %v338_v17 }
  0x8d   : > { %442 = vmatprep.mubr.f32.mxu0 %v825_v9 }
  0x8f   : > { %v339_v18 = vpop.trf.xlu0 }
  0x90   : > { %748 = vmatmul.mubr.msk.f32.gmra.mrb[4].mxu0 %vm353_vm1, %v339_v18  ;;  %v572_v18 = vld [vmem:[%s911_s23 + $0x10] sm:$0xff] }
  0x91   : > { %448 = vmatprep.mubr.f32.mxu0 %v825_v9 }
  0x93   : > { %v340_v19 = vpop.trf.xlu0 }
  0x94   : > { %749 = vmatmul.mubr.msk.f32.gmra.mrb[6].mxu0 %vm353_vm1, %v340_v19 }
  0xed   : > { %v526_v20 = vpop.f32.mrb[0].mxu1 }
  0xee   : > { %v528_v21 = vpop.f32.mrb[1].mxu1 }
  0xef   : > { %v530_v22 = vpop.f32.mrb[2].mxu1 }
  0xf0   : > { %v532_v23 = vpop.f32.mrb[3].mxu1 }
  0xf5   : > { %v536_v24 = vpop.f32.mrb[4].mxu1 }
  0xf6   : > { %v538_v25 = vpop.f32.mrb[5].mxu1 }
  0xf7   : > { %v540_v26 = vpop.f32.mrb[6].mxu1 }
  0xf8   : > { %v542_v27 = vpop.f32.mrb[7].mxu1 }
 0x15b   : > { %v432_v28 = vpop.f32.mrb[0].mxu0 }
 0x15c   : > { %v527_v30 = vadd.f32 %v526_v20, %v432_v28  ;;  %v434_v31 = vpop.f32.mrb[1].mxu0 }
 0x15d   : > { %v529_v33 = vadd.f32 %v528_v21, %v434_v31 }
 0x15e   : > { %v553_v34 = vadd.f32 %v545_v29, %v527_v30 }
 0x15f   : > { %v438_v35 = vpop.f32.mrb[2].mxu0  ;;  %v554_v37 = vadd.f32 %v546_v32, %v529_v33 }
 0x160   : > { %v531_v38 = vadd.f32 %v530_v22, %v438_v35  ;;  %v440_v39 = vpop.f32.mrb[3].mxu0  ;;  %v599_v41 = vmul.f32 %v553_v34, %v553_v34 }
 0x161   : > { %v533_v42 = vadd.f32 %v532_v23, %v440_v39  ;;  %v574_v43 = vadd.f32 %v554_v37, %v553_v34  ;;  %v600_v44 = vmul.f32 %v554_v37, %v554_v37  ;;  %v573_v23 = vld [vmem:[%s911_s23 + $0x18] sm:$0xff] }
 0x162   : > { %v555_v45 = vadd.f32 %v547_v36, %v531_v38 }
 0x163   : > { %v556_v46 = vadd.f32 %v548_v40, %v533_v42  ;;  %v444_v47 = vpop.f32.mrb[4].mxu0  ;;  %575 = vadd.xlane.f32.xlu1 %v574_v43  ;;  %v607_v49 = vadd.f32 %v600_v44, %v599_v41 }
 0x164   : > { %v537_v50 = vadd.f32 %v536_v24, %v444_v47  ;;  %v446_v51 = vpop.f32.mrb[5].mxu0  ;;  %v601_v53 = vmul.f32 %v555_v45, %v555_v45 }
 0x165   : > { %v539_v54 = vadd.f32 %v538_v25, %v446_v51  ;;  %v577_v55 = vadd.f32 %v556_v46, %v555_v45  ;;  %v602_v56 = vmul.f32 %v556_v46, %v556_v46 }
 0x166   : > { %v557_v57 = vadd.f32 %v549_v48, %v537_v50 }
 0x167   : > { %v558_v58 = vadd.f32 %v550_v52, %v539_v54  ;;  %v450_v59 = vpop.f32.mrb[6].mxu0  ;;  %578 = vadd.xlane.f32.xlu1 %v577_v55  ;;  %v610_v61 = vadd.f32 %v602_v56, %v601_v53 }
 0x168   : > { %v541_v62 = vadd.f32 %v540_v26, %v450_v59  ;;  %v452_v63 = vpop.f32.mrb[7].mxu0  ;;  %v603_v1 = vmul.f32 %v557_v57, %v557_v57 }
 0x169   : > { %v543_v2 = vadd.f32 %v542_v27, %v452_v63  ;;  %v580_v3 = vadd.f32 %v558_v58, %v557_v57  ;;  %v604_v4 = vmul.f32 %v558_v58, %v558_v58 }
 0x16a   : > { %v559_v5 = vadd.f32 %v551_v60, %v541_v62 }
 0x16b   : > { %v560_v6 = vadd.f32 %v552_v0, %v543_v2  ;;  %581 = vadd.xlane.f32.xlu0 %v580_v3  ;;  %608 = vadd.xlane.f32.xlu1 %v607_v49  ;;  %v613_v7 = vadd.f32 %v604_v4, %v603_v1 }
 0x16c   : > { %v605_v8 = vmul.f32 %v559_v5, %v559_v5 }
 0x16d   : > { %v583_v9 = vadd.f32 %v560_v6, %v559_v5  ;;  %v606_v10 = vmul.f32 %v560_v6, %v560_v6 }
 0x16f   : > { %584 = vadd.xlane.f32.xlu1 %v583_v9  ;;  %v616_v11 = vadd.f32 %v606_v10, %v605_v8 }
 0x173   : > { %611 = vadd.xlane.f32.xlu1 %v610_v61 }
 0x177   : > { %614 = vadd.xlane.f32.xlu1 %v613_v7 }
 0x17b   : > { %617 = vadd.xlane.f32.xlu1 %v616_v11 }
 0x1f0   : > { %v576_v13 = vpop.xlane.xlu1 %575 }
 0x1f1   : > { %v586_v14 = vadd.f32 %v576_v13, %v570_v12 }
 0x1f3   : > { %591 = vst.msk [vmem:[%s911_s23] sm:$0xff] %vm590_vm3, %v586_v14 }
 0x1f4   : > { %v579_v16 = vpop.xlane.xlu1 %578 }
 0x1f5   : > { %v587_v17 = vadd.f32 %v579_v16, %v571_v15 }
 0x1f7   : > { %592 = vst.msk [vmem:[%s911_s23 + $0x8] sm:$0xff] %vm590_vm3, %v587_v17 }
 0x1f8   : > { %v582_v19 = vpop.xlane.xlu0 %581  ;;  %v609_v20 = vpop.xlane.xlu1 %608 }
 0x1f9   : > { %v588_v21 = vadd.f32 %v582_v19, %v572_v18 }
 0x1fa   : > { %v595_v22 = vld [vmem:[%s911_s23] sm:$0xff] }
 0x1fb   : > { %593 = vst.msk [vmem:[%s911_s23 + $0x10] sm:$0xff] %vm590_vm3, %v588_v21  ;;  %v619_v24 = vadd.f32 %v609_v20, %v595_v22 }
 0x1fc   : > { %v585_v25 = vpop.xlane.xlu1 %584 }
 0x1fd   : > { %624 = vst.msk [vmem:[%s911_s23] sm:$0xff] %vm623_vm4, %v619_v24  ;;  %v589_v26 = vadd.f32 %v585_v25, %v573_v23 }
 0x1fe   : > { %v596_v27 = vld [vmem:[%s911_s23 + $0x8] sm:$0xff] }
 0x1ff   : > { %594 = vst.msk [vmem:[%s911_s23 + $0x18] sm:$0xff] %vm590_vm3, %v589_v26 }
 0x200   : > { %v612_v28 = vpop.xlane.xlu1 %611 }
 0x201   : > { %v620_v29 = vadd.f32 %v612_v28, %v596_v27 }
 0x202   : > { %v597_v30 = vld [vmem:[%s911_s23 + $0x10] sm:$0xff] }
 0x203   : > { %625 = vst.msk [vmem:[%s911_s23 + $0x8] sm:$0xff] %vm623_vm4, %v620_v29 }
 0x204   : > { %v615_v31 = vpop.xlane.xlu1 %614 }
 0x205   : > { %v621_v32 = vadd.f32 %v615_v31, %v597_v30 }
 0x206   : > { %v598_v33 = vld [vmem:[%s911_s23 + $0x18] sm:$0xff] }
 0x207   : > { %626 = vst.msk [vmem:[%s911_s23 + $0x10] sm:$0xff] %vm623_vm4, %v621_v32 }
 0x208   : > { %v618_v34 = vpop.xlane.xlu1 %617 }
 0x209   : > { %v622_v35 = vadd.f32 %v618_v34, %v598_v33 }
 0x20b   : > { %627 = vst.msk [vmem:[%s911_s23 + $0x18] sm:$0xff] %vm623_vm4, %v622_v35 }
 0x20c PF: > { %s15_s20 = sadd.s32 1, %s822_s20   ;;  %s980_s18 = smov %s818_s19 }
 0x20d   : > { %p12_p5 = scmp.ge.s32.totalorder %s15_s20, 4   ;;  %s981_s19 = smov %s983_s21 }
 0x20f   :  { %14 = sbr.rel (!%p12_p5) target bundleno = 2 (0x2), region = 77 }

// kernel: ifa_forward.3
= control target key start
LH: loop header
LB: loop body
LE: loop exit
PB: predicated region body
PF: predicated region fallthrough
CT: control target
= control target key end

     0   :  { %s1122_s30 = smov 0   ;;  %s1124_s10 = smov 0   ;;  %s1269_s0 = inlined_call_operand.vmem [shape: bf16[2,32,256], index: 0, kind: input, shape index: {}]   ;;  %s1270_s1 = inlined_call_operand.vmem [shape: f32[16,32], index: 1, kind: input, shape index: {}]   ;;  %s1271_s2 = inlined_call_operand.vmem [shape: f32[16,256], index: 2, kind: input, shape index: {}]   ;;  %s1272_s3 = inlined_call_operand.vmem [shape: f32[32,256], index: 3, kind: input, shape index: {}]   ;;  %s1273_s4 = inlined_call_operand.vmem [shape: bf16[32,32], index: 4, kind: input, shape index: {}]   ;;  %s1274_s5 = inlined_call_operand.vmem [shape: f32[32,1], index: 5, kind: input, shape index: {}]   ;;  %s1275_s6 = inlined_call_operand.vmem [shape: f32[32,1], index: 6, kind: input, shape index: {}]   ;;  %s1276_s7 = inlined_call_operand.vmem [shape: bf16[32,32], index: 7, kind: input, shape index: {}]   ;;  %s1277_s8 = inlined_call_operand.vmem [shape: f32[32,1], index: 8, kind: input, shape index: {}]   ;;  %s1278_s9 = inlined_call_operand.vmem [shape: f32[2,32,256], index: 9, kind: output, shape index: {}]  }
   0x1   :  { %s1126_s11 = smov 0  }
   0x2 LB: > { %s38_s12 = sadd.s32 1, %s1064_s10  ;;  %p977_p0 = scmp.ge.s32.totalorder %s1068_s11, 1  ;;  %s1068_s11 = sphi %s1126_s11, %s19_s11   ;;  %s1064_s10 = sphi %s1124_s10, %s1280_s10   ;;  %s1060_s30 = sphi %s1122_s30, %s1279_s30  }
   0x3   : > { %p40_p1 = scmp.ge.s32.totalorder %s38_s12, 2  ;;  %p336_p2 = scmp.lt.s32.totalorder %s1068_s11, 3 }
   0x5   : > { %s1282_s12 = smov (%p40_p1, %s38_s12), 0  ;;  %p337_p3 = pnand %p977_p0, %p336_p2 }
   0x6   : > { %v429_v0 = vld [vmem:[%s1270_s1] sm:$0xff] (!%p337_p3)  ;;  %v432_v1 = vld [vmem:[%s1271_s2 + $0x8] sm:$0xff] (!%p337_p3)  ;;  %v434_v2 = vld [vmem:[%s1271_s2 + $0x18] sm:$0xff] (!%p337_p3)  ;;  %v1070_v5 = vmov (!%p337_p3), 0.0   ;;  %p390_p4 = scmp.lt.s32.totalorder (!%p337_p3), %s1060_s30, 1  ;;  %v1071_v10 = vmov (!%p337_p3), 0  }
   0x7   : > { %340 = sbr.rel (%p337_p3) target bundleno = 619 (0x26b), region = 56  ;;  %435 = vxpose.xlu0.b32.start [1/2] (short) (narrow) (!%p337_p3), %v429_v0, 32  ;;  %v431_v3 = vld [vmem:[%s1271_s2] sm:$0xff] (!%p337_p3)  ;;  %v433_v4 = vld [vmem:[%s1271_s2 + $0x10] sm:$0xff] (!%p337_p3)  ;;  %544 = vmatprep.mubr.f32.mxu0 (!%p337_p3), %v1070_v5  ;;  %v430_v6 = vld [vmem:[%s1270_s1 + $0x8] sm:$0xff] (!%p337_p3)  ;;  %v1002_v7 = vpack.c.bf16 (!%p337_p3), %v434_v2, %v432_v1  ;;  %vm467_vm0 = vcmask (!%p337_p3), 130048  }
   0x8   : > { %v1004_v8 = vpack.c.bf16 (!%p337_p3), %v433_v4, %v431_v3  ;;  %556 = vmatprep.mubr.f32.mxu1 (!%p337_p3), %v1070_v5  ;;  %1034 = vset.pattern.permute.xlu1 (!%p337_p3), %v1071_v10  ;;  %v675_v11 = vld [vmem:[%s1274_s5] sm:$0xff] (!%p337_p3)  ;;  %v676_v12 = vld [vmem:[%s1274_s5 + $0x8] sm:$0xff] (!%p337_p3)  ;;  %v677_v14 = vld [vmem:[%s1274_s5 + $0x10] sm:$0xff] (!%p337_p3)  ;;  %vm599_vm1 = vcmask (!%p337_p3), 261120  }
   0x9   : > { %1003 = vmatprep.subr.bf16.mxu0 (!%p337_p3), %v1002_v7  ;;  %1006 = vmatprep.subr.bf16.mxu1 (!%p337_p3), %v1002_v7  ;;  %v708_v13 = vld [vmem:[%s1275_s6 + $0x8] sm:$0xff] (!%p337_p3)  ;;  %v678_v15 = vld [vmem:[%s1274_s5 + $0x18] sm:$0xff] (!%p337_p3)  ;;  %v709_v16 = vld [vmem:[%s1275_s6 + $0x10] sm:$0xff] (!%p337_p3) }
   0xa   : > { %1005 = vmatpush1.bf16.msra.mxu0 (!%p337_p3), %v1004_v8  ;;  %1007 = vmatpush1.bf16.msra.mxu1 (!%p337_p3), %v1004_v8  ;;  %v710_v17 = vld [vmem:[%s1275_s6 + $0x18] sm:$0xff] (!%p337_p3)  ;;  %v707_v18 = vld [vmem:[%s1275_s6] sm:$0xff] (!%p337_p3)  ;;  %v764_v20 = vld [vmem:[%s1277_s8 + $0x8] sm:$0xff] (!%p337_p3) }
   0xb   : > { %436 = vxpose.xlu0.b32.end [2/2] (short) (narrow) (!%p337_p3), %v430_v6, 32  ;;  %681 = vperm.xlu1 (!%p337_p3), %1034, %v675_v11   ;;  %v763_v19 = vld [vmem:[%s1277_s8] sm:$0xff] (!%p337_p3)  ;;  %v765_v21 = vld [vmem:[%s1277_s8 + $0x10] sm:$0xff] (!%p337_p3)  ;;  %v766_v22 = vld [vmem:[%s1277_s8 + $0x18] sm:$0xff] (!%p337_p3) }
   0xc   : > { %v1042_v30 = vld [vmem:[%s1273_s4] sm:$0xff] (!%p337_p3)   ;;  %v1043_v31 = vld [vmem:[%s1273_s4 + $0x8] sm:$0xff] (!%p337_p3)   ;;  %v661_v51 = vld [vmem:[%s1272_s3 + $0x10] sm:$0xff] (!%p337_p3) }
   0xd   : > { %v659_v45 = vld [vmem:[%s1272_s3] sm:$0xff] (!%p337_p3)  ;;  %v660_v48 = vld [vmem:[%s1272_s3 + $0x8] sm:$0xff] (!%p337_p3)  ;;  %v662_v55 = vld [vmem:[%s1272_s3 + $0x18] sm:$0xff] (!%p337_p3) }
   0xe   : > { %s1284_s30 = smov (!%p390_p4, %s1060_s30), 1  ;;  %v664_v11 = vld [vmem:[%s1272_s3 + $0x28] sm:$0xff] }
   0xf   : > { %s1000_s25 = sshll.u32 %s1284_s30, 5  ;;  %686 = vperm.xlu1 %1034, %v676_v12   ;;  %s1001_s26 = sshll.u32 %s1284_s30, 6 }
  0x10   : > { %s1164_s28 = scalar_lea.vmem %s1269_s0, %s1000_s25  ;;  %s417_s13 = scalar_lea.vmem %s1278_s9, %s1001_s26 }
  0x11   : > { %v1038_v9 = vld [vmem:[%s1164_s28 + $0x4] ss:$8 sps:$4 sm:$0xff]   ;;  %v1036_v25 = vld [vmem:[%s1164_s28] ss:$8 sps:$4 sm:$0xff]   ;;  %v1041_v26 = vld [vmem:[%s1164_s28 + $0x14] ss:$8 sps:$4 sm:$0xff]  }
  0x12   : > { %606 = vmatprep.subr.bf16.mxu1 %v1038_v9  ;;  %v1039_v28 = vld [vmem:[%s1164_s28 + $0x10] ss:$8 sps:$4 sm:$0xff]  }
  0x13   : > { %718 = vperm.xlu1 %1034, %v708_v13  }
  0x17   : > { %691 = vperm.xlu1 %1034, %v677_v14  }
  0x1b   : > { %696 = vperm.xlu1 %1034, %v678_v15  }
  0x1f   : > { %723 = vperm.xlu1 %1034, %v709_v16  }
  0x23   : > { %728 = vperm.xlu1 %1034, %v710_v17   ;;  %v665_v17 = vld [vmem:[%s1272_s3 + $0x30] sm:$0xff] }
  0x27   : > { %769 = vperm.xlu1 %1034, %v763_v19  }
  0x2b   : > { %774 = vperm.xlu1 %1034, %v764_v20  }
  0x2f   : > { %779 = vperm.xlu1 %1034, %v765_v21  }
  0x33   : > { %784 = vperm.xlu1 %1034, %v766_v22   ;;  %v666_v22 = vld [vmem:[%s1272_s3 + $0x38] sm:$0xff] }
  0x34   : > { %1035 = vset.pattern.permute.xlu0 %v1071_v10 }
  0x3c   : > { %713 = vperm.xlu0 %1035, %v707_v18  }
  0x87   : > { %v451_v23 = vpop.trf.xlu0 }
  0x88   : > { %982 = vmatmul.mubr.msk.f32.vlgmr.msra.gmra.mrb[0].mxu0 %vm467_vm0, %v451_v23 }
  0x89   : > { %550 = vmatprep.mubr.f32.mxu0 %v1070_v5 }
  0x8a   : > { %v682_v32 = vpop.permute.xlu1 %681 }
  0x8b   : > { %v452_v24 = vpop.trf.xlu0 }
  0x8c   : > { %983 = vmatmul.mubr.msk.f32.gmra.mrb[2].mxu0 %vm467_vm0, %v452_v24 }
  0x8d   : > { %835 = vmatprep.mubr.bf16.mxu0 %v1071_v10 }
  0x8e   : > { %v687_v35 = vpop.permute.xlu1 %686 }
  0x8f   : > { %v453_v27 = vpop.trf.xlu0 }
  0x90   : > { %984 = vmatmul.mubr.msk.f32.vlgmr.msra.gmra.mrb[0].mxu1 %vm467_vm0, %v453_v27 }
  0x91   : > { %607 = vmatpush1.bf16.msra.mxu1 %v1036_v25  ;;  %562 = vmatprep.mubr.f32.mxu1 %v1070_v5  ;;  %v663_v5 = vld [vmem:[%s1272_s3 + $0x20] sm:$0xff] }
  0x92   : > { %608 = vmatprep.subr.bf16.mxu1 %v1041_v26  ;;  %v719_v38 = vpop.permute.xlu1 %718 }
  0x93   : > { %v454_v29 = vpop.trf.xlu0 }
  0x94   : > { %985 = vmatmul.mubr.msk.f32.gmra.mrb[2].mxu1 %vm467_vm0, %v454_v29 }
  0x95   : > { %609 = vmatpush1.bf16.msra.mxu1 %v1039_v28  ;;  %638 = vmatprep.mubr.bf16.mxu1 %v1071_v10 }
  0x96   : > { %v692_v43 = vpop.permute.xlu1 %691 }
  0x98   : > { %992 = vmatmul.mubr.msk.bf16.vlgmr.msra.gmra.mrb[4].mxu1 %vm599_vm1, %v1042_v30 }
  0x99   : > { %648 = vmatprep.mubr.bf16.mxu1 %v1071_v10 }
  0x9a   : > { %v697_v56 = vpop.permute.xlu1 %696 }
  0x9e   : > { %v724_v12 = vpop.permute.xlu1 %723 }
  0xa0   : > { %993 = vmatmul.mubr.msk.bf16.gmra.mrb[8].mxu1 %vm599_vm1, %v1043_v31 }
  0xbb   : > { %v714_v59 = vpop.permute.xlu0 %713 }
 0x15b   : > { %v546_v33 = vpop.f32.mrb[0].mxu0 }
 0x15c   : > { %v548_v34 = vpop.f32.mrb[1].mxu0 }
 0x15f   : > { %v552_v36 = vpop.f32.mrb[2].mxu0 }
 0x160   : > { %v554_v37 = vpop.f32.mrb[3].mxu0 }
 0x163   : > { %v558_v39 = vpop.f32.mrb[0].mxu1 }
 0x164   : > { %v560_v40 = vpop.f32.mrb[1].mxu1 }
 0x167   : > { %v564_v41 = vpop.f32.mrb[2].mxu1 }
 0x168   : > { %v566_v42 = vpop.f32.mrb[3].mxu1 }
 0x16b   : > { %v640_v44 = vpop.f32.mrb[4].mxu1 }
 0x16c   : > { %v641_v46 = vadd.f32 %v640_v44, %v546_v33  ;;  %v642_v47 = vpop.f32.mrb[5].mxu1 }
 0x16d   : > { %v643_v49 = vadd.f32 %v642_v47, %v548_v34  ;;  %v644_v50 = vpop.f32.mrb[6].mxu1 }
 0x16e   : > { %v667_v52 = vadd.f32 %v659_v45, %v641_v46  ;;  %v645_v53 = vadd.f32 %v644_v50, %v552_v36  ;;  %v646_v54 = vpop.f32.mrb[7].mxu1 }
 0x16f   : > { %v668_v57 = vadd.f32 %v660_v48, %v643_v49  ;;  %v647_v58 = vadd.f32 %v646_v54, %v554_v37  ;;  %v729_v37 = vpop.permute.xlu1 %728  ;;  %v1045_v54 = vld [vmem:[%s1276_s7 + $0x8] sm:$0xff]  }
 0x170   : > { %v669_v60 = vadd.f32 %v661_v51, %v645_v53  ;;  %v699_v61 = vmul.f32 %v682_v32, %v667_v52  ;;  %v1044_v53 = vld [vmem:[%s1276_s7] sm:$0xff]  }
 0x171   : > { %v670_v62 = vadd.f32 %v662_v55, %v647_v58  ;;  %v700_v63 = vmul.f32 %v682_v32, %v668_v57 }
 0x172   : > { %v701_v0 = vmul.f32 %v687_v35, %v669_v60  ;;  %v731_v1 = vadd.f32 %v714_v59, %v699_v61 }
 0x173   : > { %v702_v2 = vmul.f32 %v687_v35, %v670_v62  ;;  %v732_v3 = vadd.f32 %v714_v59, %v700_v63  ;;  %v650_v4 = vpop.f32.mrb[8].mxu1  ;;  %v770_v55 = vpop.permute.xlu1 %769 }
 0x174   : > { %v733_v6 = vadd.f32 %v719_v38, %v701_v0  ;;  %v739_v7 = vmul.f32 0.01, %v731_v1  ;;  %v651_v8 = vadd.f32 %v650_v4, %v558_v39  ;;  %v652_v9 = vpop.f32.mrb[9].mxu1 }
 0x175   : > { %v734_v13 = vadd.f32 %v719_v38, %v702_v2  ;;  %v740_v14 = vmul.f32 0.01, %v732_v3  ;;  %v653_v15 = vadd.f32 %v652_v9, %v560_v40  ;;  %v654_v16 = vpop.f32.mrb[10].mxu1 }
 0x176   : > { %v741_v18 = vmul.f32 0.01, %v733_v6  ;;  %v671_v19 = vadd.f32 %v663_v5, %v651_v8  ;;  %v655_v20 = vadd.f32 %v654_v16, %v564_v41  ;;  %v656_v21 = vpop.f32.mrb[11].mxu1  ;;  %v747_v26 = vmax.f32 %v731_v1, %v739_v7 }
 0x177   : > { %v672_v23 = vadd.f32 %v664_v11, %v653_v15  ;;  %v657_v24 = vadd.f32 %v656_v21, %v566_v42  ;;  %v742_v25 = vmul.f32 0.01, %v734_v13  ;;  %v748_v30 = vmax.f32 %v732_v3, %v740_v14 }
 0x178   : > { %v749_v27 = vmax.f32 %v733_v6, %v741_v18  ;;  %v703_v28 = vmul.f32 %v692_v43, %v671_v19  ;;  %v673_v29 = vadd.f32 %v665_v17, %v655_v20 }
 0x179   : > { %v704_v31 = vmul.f32 %v692_v43, %v672_v23  ;;  %v674_v32 = vadd.f32 %v666_v22, %v657_v24  ;;  %v750_v33 = vmax.f32 %v734_v13, %v742_v25 }
 0x17a   : > { %v759_v34 = vpack.c.bf16 %v749_v27, %v747_v26  ;;  %v735_v35 = vadd.f32 %v724_v12, %v703_v28  ;;  %v705_v36 = vmul.f32 %v697_v56, %v673_v29 }
 0x17b   : > { %v736_v38 = vadd.f32 %v724_v12, %v704_v31  ;;  %v706_v39 = vmul.f32 %v697_v56, %v674_v32  ;;  %v760_v40 = vpack.c.bf16 %v750_v33, %v748_v30  ;;  %v775_v56 = vpop.permute.xlu1 %774 }
 0x17c   : > { %v743_v41 = vmul.f32 0.01, %v735_v35  ;;  %v737_v44 = vadd.f32 %v729_v37, %v705_v36 }
 0x17d   : > { %v738_v45 = vadd.f32 %v729_v37, %v706_v39  ;;  %803 = vmatprep.subr.bf16.mxu0 %v760_v40  ;;  %v744_v42 = vmul.f32 0.01, %v736_v38 }
 0x17e   : > { %v745_v46 = vmul.f32 0.01, %v737_v44  ;;  %804 = vmatpush1.bf16.msra.mxu0 %v759_v34  ;;  %v751_v48 = vmax.f32 %v735_v35, %v743_v41 }
 0x17f   : > { %v746_v47 = vmul.f32 0.01, %v738_v45  ;;  %v752_v49 = vmax.f32 %v736_v38, %v744_v42  ;;  %v780_v63 = vpop.permute.xlu1 %779 }
 0x180   : > { %v753_v43 = vmax.f32 %v737_v44, %v745_v46 }
 0x181   : > { %v754_v50 = vmax.f32 %v738_v45, %v746_v47 }
 0x182   : > { %v761_v51 = vpack.c.bf16 %v753_v43, %v751_v48 }
 0x183   : > { %v762_v52 = vpack.c.bf16 %v754_v50, %v752_v49  ;;  %v785_v4 = vpop.permute.xlu1 %784 }
 0x185   : > { %805 = vmatprep.subr.bf16.mxu0 %v762_v52 }
 0x186   : > { %806 = vmatpush1.bf16.msra.mxu0 %v761_v51 }
 0x189   : > { %996 = vmatmul.mubr.msk.bf16.vlgmr.msra.gmra.mrb[4].mxu0 %vm599_vm1, %v1044_v53 }
 0x18a   : > { %845 = vmatprep.mubr.bf16.mxu0 %v1071_v10 }
 0x191   : > { %997 = vmatmul.mubr.msk.bf16.gmra.mrb[8].mxu0 %vm599_vm1, %v1045_v54 }
 0x25c   : > { %v837_v57 = vpop.f32.mrb[4].mxu0 }
 0x25d   : > { %v838_v58 = vadd.f32 %v837_v57, %v770_v55  ;;  %v839_v59 = vpop.f32.mrb[5].mxu0 }
 0x25e   : > { %v840_v60 = vadd.f32 %v839_v59, %v770_v55  ;;  %v841_v61 = vpop.f32.mrb[6].mxu0 }
 0x25f   : > { %856 = vst [vmem:[%s417_s13] sm:$0xff] %v838_v58  ;;  %v842_v10 = vadd.f32 %v841_v61, %v775_v56  ;;  %v843_v62 = vpop.f32.mrb[7].mxu0 }
 0x260   : > { %857 = vst [vmem:[%s417_s13 + $0x8] sm:$0xff] %v840_v60  ;;  %v844_v0 = vadd.f32 %v843_v62, %v775_v56 }
 0x261   : > { %858 = vst [vmem:[%s417_s13 + $0x10] sm:$0xff] %v842_v10 }
 0x262   : > { %859 = vst [vmem:[%s417_s13 + $0x18] sm:$0xff] %v844_v0 }
 0x264   : > { %v847_v1 = vpop.f32.mrb[8].mxu0 }
 0x265   : > { %v848_v2 = vadd.f32 %v847_v1, %v780_v63  ;;  %v849_v3 = vpop.f32.mrb[9].mxu0 }
 0x266   : > { %v850_v5 = vadd.f32 %v849_v3, %v780_v63  ;;  %v851_v6 = vpop.f32.mrb[10].mxu0 }
 0x267   : > { %860 = vst [vmem:[%s417_s13 + $0x20] sm:$0xff] %v848_v2  ;;  %v852_v7 = vadd.f32 %v851_v6, %v785_v4  ;;  %v853_v8 = vpop.f32.mrb[11].mxu0 }
 0x268   : > { %861 = vst [vmem:[%s417_s13 + $0x28] sm:$0xff] %v850_v5  ;;  %v854_v9 = vadd.f32 %v853_v8, %v785_v4 }
 0x269   : > { %862 = vst [vmem:[%s417_s13 + $0x30] sm:$0xff] %v852_v7 }
 0x26a   : > { %863 = vst [vmem:[%s417_s13 + $0x38] sm:$0xff] %v854_v9 }
 0x26b PF: > { %s19_s11 = sadd.s32 1, %s1068_s11   ;;  %s1279_s30 = smov %s1064_s10 }
 0x26c   : > { %p16_p5 = scmp.ge.s32.totalorder %s19_s11, 4   ;;  %s1280_s10 = smov %s1282_s12 }
 0x26e   :  { %18 = sbr.rel (!%p16_p5) target bundleno = 2 (0x2), region = 89 }

</bundles_post_ra>
